<compile_context>
chip_gen: v7x
topology: tpu7x:2x2x1
jax: 0.10.0
libtpu: 0.0.40
codegen_flags: <defaults>
</compile_context>

<pallas_src>
import functools

import jax
import jax.numpy as jnp
from jax.experimental import pallas as pl
from jax.experimental.pallas import tpu as pltpu


_VMEM_LIMIT_BYTES = 48 * 1024 * 1024   # <= v7x physical (64 MiB), << v5e/v6e (128 MiB)
_VMEM_HEADROOM_BYTES = 6 * 1024 * 1024


def _fwd_kernel(x_ref, w1_ref, b1_ref, w2_ref, b2_ref, o_ref):
    # x_ref:  (TB, K)        -- one batch tile of x reshaped to (B, C*L)
    # w1_ref: (K, H_pad)     -- mean-pool fused weight (already scaled by 1/L)
    # b1_ref: (1, H_pad)     -- f32
    # w2_ref: (H_pad, N_pad) -- zero-padded, compute dtype
    # b2_ref: (1, N_pad)     -- f32
    # o_ref:  (TB, N_pad)    -- compute dtype

    # Fused mean-pool + Linear(C -> 32): single MXU matmul, f32 accumulation.
    h = jnp.dot(x_ref[...], w1_ref[...], preferred_element_type=jnp.float32)
    # Dropout(0.5) is identity in eval mode.
    # TODO(synk): training-mode dropout (stochastic masking) not implemented.
    h = jnp.maximum(h + b1_ref[...], 0.0)

    # Linear(32 -> n_classes), lane-dense 128-wide output.
    out = jnp.dot(h.astype(w2_ref.dtype), w2_ref[...],
                  preferred_element_type=jnp.float32)
    o_ref[...] = (out + b2_ref[...]).astype(o_ref.dtype)


def linear_feature_extractor_classifier_fwd(x, w1, b1, w2, b2, *, max_block_b=2048):
    """x: (B, C, L), w1: (C, H), b1: (H,), w2: (H, n_classes), b2: (n_classes,).

    Computes in x.dtype (pass bf16 x for halved HBM traffic); returns x.dtype.
    """
    B, C, L = x.shape
    H = w1.shape[1]
    n_classes = w2.shape[1]
    K = C * L
    compute_dtype = x.dtype
    itemsize_x = jnp.dtype(compute_dtype).itemsize

    # --- Wrapper-side weight preparation (trace-time constants, tiny) ---------
    # Fuse mean pooling + first Linear; fold the 1/L scale into the weight.
    # Pad the hidden dim to 128 so h / bias / ReLU / second contraction are
    # lane-dense; pad the classifier dim to 128 so stores are unmasked vst.
    h_pad = pl.cdiv(H, 128) * 128
    n_pad = pl.cdiv(n_classes, 128) * 128

    w1_big = jnp.repeat(w1.astype(jnp.float32), L, axis=0) / jnp.float32(L)  # (K, H)
    w1_big = jnp.pad(w1_big, ((0, 0), (0, h_pad - H))).astype(compute_dtype)  # (K, H_pad)
    b1_row = jnp.pad(b1.astype(jnp.float32), (0, h_pad - H)).reshape(1, h_pad)

    w2_pad = jnp.pad(w2.astype(jnp.float32),
                     ((0, h_pad - H), (0, n_pad - n_classes))).astype(compute_dtype)
    b2_row = jnp.pad(b2.astype(jnp.float32), (0, n_pad - n_classes)).reshape(1, n_pad)

    # --- Input view (free) + VMEM-budgeted batch tiling ------------------------
    x2d = x.reshape(B, K)          # row-major contiguous -> free reshape, no copy

    # Sublane packing per dtype: f32 -> 8 rows, bf16 -> 16, int8/fp8 -> 32.
    sub_mult = 8 * max(1, 4 // itemsize_x)

    weight_bytes = (K * h_pad * itemsize_x + h_pad * n_pad * itemsize_x
                    + h_pad * 4 + n_pad * 4)
    per_row_bytes = 2 * K * itemsize_x + 2 * n_pad * itemsize_x  # dbl-buffered in+out
    budget = _VMEM_LIMIT_BYTES - _VMEM_HEADROOM_BYTES - weight_bytes
    tb = max(budget // per_row_bytes, sub_mult)
    tb = min(tb, max_block_b)

    # Leave >= 2 grid steps when B is big enough so both v7x TCs get work.
    if B >= 2 * sub_mult:
        half = ((pl.cdiv(B, 2) + sub_mult - 1) // sub_mult) * sub_mult
        tb = min(tb, half)

    if tb >= B:
        tb = B                                   # single block == full dim (always legal)
    else:
        tb = max((tb // sub_mult) * sub_mult, sub_mult)
    grid = (pl.cdiv(B, tb),)                     # partial trailing block handled by Pallas

    cost = pl.CostEstimate(
        flops=2 * B * K * h_pad + 2 * B * h_pad * n_pad,
        transcendentals=0,
        bytes_accessed=(B * K * itemsize_x            # input tiles
                        + K * h_pad * itemsize_x      # fused W1
                        + h_pad * n_pad * itemsize_x  # W2
                        + (h_pad + n_pad) * 4         # biases
                        + B * n_pad * itemsize_x),    # output
    )

    out_padded = pl.pallas_call(
        _fwd_kernel,
        out_shape=jax.ShapeDtypeStruct((B, n_pad), compute_dtype),
        grid_spec=pltpu.PrefetchScalarGridSpec(
            num_scalar_prefetch=0,
            grid=grid,
            in_specs=[
                pl.BlockSpec((tb, K), lambda i: (i, 0)),         # x tile (pipelined)
                pl.BlockSpec((K, h_pad), lambda i: (0, 0)),      # W1_big (resident)
                pl.BlockSpec((1, h_pad), lambda i: (0, 0)),      # b1
                pl.BlockSpec((h_pad, n_pad), lambda i: (0, 0)),  # W2 (padded)
                pl.BlockSpec((1, n_pad), lambda i: (0, 0)),      # b2 (padded)
            ],
            out_specs=pl.BlockSpec((tb, n_pad), lambda i: (i, 0)),
        ),
        compiler_params=pltpu.CompilerParams(
            dimension_semantics=("parallel",),
            vmem_limit_bytes=_VMEM_LIMIT_BYTES,
        ),
        cost_estimate=cost,
    )(x2d, w1_big, b1_row, w2_pad, b2_row)

    return out_padded[:, :n_classes]


def _reference(x, w1, b1, w2, b2):
    pooled = jnp.mean(x.astype(jnp.float32), axis=-1)
    h = jnp.maximum(pooled @ w1 + b1, 0.0)
    return h @ w2 + b2


if __name__ == "__main__":
    # Small shapes consistent with the module: (batch, in_channels, length)
    B, C, L = 4, 16, 64
    HIDDEN, N_CLASSES = 32, 8

    key = jax.random.PRNGKey(0)
    kx, kw1, kb1, kw2, kb2 = jax.random.split(key, 5)

    x = jax.random.normal(kx, (B, C, L), dtype=jnp.float32)

    # Deterministic synthetic parameter init (PyTorch default-like uniform scale).
    w1 = jax.random.uniform(kw1, (C, HIDDEN), jnp.float32, -1.0, 1.0) / jnp.sqrt(C)
    b1 = jax.random.uniform(kb1, (HIDDEN,), jnp.float32, -1.0, 1.0) / jnp.sqrt(C)
    w2 = jax.random.uniform(kw2, (HIDDEN, N_CLASSES), jnp.float32, -1.0, 1.0) / jnp.sqrt(HIDDEN)
    b2 = jax.random.uniform(kb2, (N_CLASSES,), jnp.float32, -1.0, 1.0) / jnp.sqrt(HIDDEN)

    fwd = jax.jit(functools.partial(linear_feature_extractor_classifier_fwd))
    out = fwd(x, w1, b1, w2, b2)
    out = jax.block_until_ready(out)

    ref = _reference(x, w1, b1, w2, b2)
    assert out.shape == (B, N_CLASSES), out.shape
    assert jnp.allclose(out, ref, atol=2e-4, rtol=2e-4), "mismatch vs. reference"

    print("KERNEL_OK")
</pallas_src>

<mosaic_0001>
module attributes {stable_mosaic.version = 11 : i64} {
  func.func @_fwd_kernel(%arg0: i32, %arg1: memref<4x1024xf32, #tpu.memory_space<vmem>>, %arg2: memref<1024x128xf32, #tpu.memory_space<vmem>>, %arg3: memref<1x128xf32, #tpu.memory_space<vmem>>, %arg4: memref<128x128xf32, #tpu.memory_space<vmem>>, %arg5: memref<1x128xf32, #tpu.memory_space<vmem>>, %arg6: memref<4x128xf32, #tpu.memory_space<vmem>>) attributes {dimension_semantics = [#tpu.dimension_semantics<parallel>], iteration_bounds = array<i64: 1>, scalar_prefetch = 0 : i64, scratch_operands = 0 : i64, tpu.core_type = #tpu.core_type<tc>, window_params = [{transform_indices = @transform_0, window_bounds = array<i64: 4, 1024>}, {pipeline_mode = #tpu.pipeline_mode<synchronous>, transform_indices = @transform_1, window_bounds = array<i64: 1024, 128>}, {pipeline_mode = #tpu.pipeline_mode<synchronous>, transform_indices = @transform_2, window_bounds = array<i64: 1, 128>}, {pipeline_mode = #tpu.pipeline_mode<synchronous>, transform_indices = @transform_3, window_bounds = array<i64: 128, 128>}, {pipeline_mode = #tpu.pipeline_mode<synchronous>, transform_indices = @transform_4, window_bounds = array<i64: 1, 128>}, {transform_indices = @transform_5, window_bounds = array<i64: 4, 128>}]} {
    %c0 = arith.constant 0 : index
    %c0_0 = arith.constant 0 : index
    %0 = vector.load %arg1[%c0, %c0_0] : memref<4x1024xf32, #tpu.memory_space<vmem>>, vector<4x1024xf32>
    %c0_1 = arith.constant 0 : index
    %c0_2 = arith.constant 0 : index
    %1 = vector.load %arg2[%c0_1, %c0_2] : memref<1024x128xf32, #tpu.memory_space<vmem>>, vector<1024x128xf32>
    %cst = arith.constant dense<0.000000e+00> : vector<4x128xf32>
    %2 = tpu.matmul %0, %1, %cst {dimension_numbers = #tpu.dot_dimension_numbers<[1], [0], [0], [1], [0, 0, 1, 1], [], []>} : vector<4x1024xf32>, vector<1024x128xf32>, vector<4x128xf32> -> vector<4x128xf32>
    %c0_3 = arith.constant 0 : index
    %c0_4 = arith.constant 0 : index
    %3 = vector.load %arg3[%c0_3, %c0_4] : memref<1x128xf32, #tpu.memory_space<vmem>>, vector<1x128xf32>
    %4 = vector.broadcast %3 : vector<1x128xf32> to vector<4x128xf32>
    %5 = arith.addf %2, %4 : vector<4x128xf32>
    %cst_5 = arith.constant 0.000000e+00 : f32
    %6 = vector.broadcast %cst_5 : f32 to vector<4x128xf32>
    %7 = arith.maximumf %5, %6 : vector<4x128xf32>
    %c0_6 = arith.constant 0 : index
    %c0_7 = arith.constant 0 : index
    %8 = vector.load %arg4[%c0_6, %c0_7] : memref<128x128xf32, #tpu.memory_space<vmem>>, vector<128x128xf32>
    %cst_8 = arith.constant dense<0.000000e+00> : vector<4x128xf32>
    %9 = tpu.matmul %7, %8, %cst_8 {dimension_numbers = #tpu.dot_dimension_numbers<[1], [0], [0], [1], [0, 0, 1, 1], [], []>} : vector<4x128xf32>, vector<128x128xf32>, vector<4x128xf32> -> vector<4x128xf32>
    %c0_9 = arith.constant 0 : index
    %c0_10 = arith.constant 0 : index
    %10 = vector.load %arg5[%c0_9, %c0_10] : memref<1x128xf32, #tpu.memory_space<vmem>>, vector<1x128xf32>
    %11 = vector.broadcast %10 : vector<1x128xf32> to vector<4x128xf32>
    %12 = arith.addf %9, %11 : vector<4x128xf32>
    %c0_11 = arith.constant 0 : index
    %c0_12 = arith.constant 0 : index
    %13 = vector.load %arg6[%c0_11, %c0_12] : memref<4x128xf32, #tpu.memory_space<vmem>>, vector<4x128xf32>
    tpu.vector_store %arg6[%c0_11, %c0_12], %12 {strides = array<i32>} : memref<4x128xf32, #tpu.memory_space<vmem>>, vector<4x128xf32>,
    return
  }
  func.func @transform_0(%arg0: i32) -> (i32, i32) {
    %c0_i32 = arith.constant 0 : i32
    %c0_i32_0 = arith.constant 0 : i32
    return %arg0, %c0_i32 : i32, i32
  }
  func.func @transform_1(%arg0: i32) -> (i32, i32) {
    %c0_i32 = arith.constant 0 : i32
    %c0_i32_0 = arith.constant 0 : i32
    %c0_i32_1 = arith.constant 0 : i32
    return %c0_i32, %c0_i32_0 : i32, i32
  }
  func.func @transform_2(%arg0: i32) -> (i32, i32) {
    %c0_i32 = arith.constant 0 : i32
    %c0_i32_0 = arith.constant 0 : i32
    %c0_i32_1 = arith.constant 0 : i32
    return %c0_i32, %c0_i32_0 : i32, i32
  }
  func.func @transform_3(%arg0: i32) -> (i32, i32) {
    %c0_i32 = arith.constant 0 : i32
    %c0_i32_0 = arith.constant 0 : i32
    %c0_i32_1 = arith.constant 0 : i32
    return %c0_i32, %c0_i32_0 : i32, i32
  }
  func.func @transform_4(%arg0: i32) -> (i32, i32) {
    %c0_i32 = arith.constant 0 : i32
    %c0_i32_0 = arith.constant 0 : i32
    %c0_i32_1 = arith.constant 0 : i32
    return %c0_i32, %c0_i32_0 : i32, i32
  }
  func.func @transform_5(%arg0: i32) -> (i32, i32) {
    %c0_i32 = arith.constant 0 : i32
    %c0_i32_0 = arith.constant 0 : i32
    return %arg0, %c0_i32 : i32, i32
  }
}

</mosaic_0001>

<bundles_post_ra>
// kernel: linear_feature_extractor_classifier_fwd.1
= control target key start
LH: loop header
LB: loop body
LE: loop exit
PB: predicated region body
PF: predicated region fallthrough
CT: control target
= control target key end

     0   :  { %s1445_s0 = inlined_call_operand.vmem [shape: f32[4,1024], index: 0, kind: input, shape index: {}]   ;;  %s1446_s1 = inlined_call_operand.vmem [shape: f32[1024,128], index: 1, kind: input, shape index: {}]   ;;  %s1447_s2 = inlined_call_operand.vmem [shape: f32[1,128], index: 2, kind: input, shape index: {}]   ;;  %s1448_s3 = inlined_call_operand.vmem [shape: f32[128,128], index: 3, kind: input, shape index: {}]   ;;  %s1449_s4 = inlined_call_operand.vmem [shape: f32[1,128], index: 4, kind: input, shape index: {}]   ;;  %s1450_s5 = inlined_call_operand.hbm [shape: f32[4,128], index: 5, kind: output, shape index: {}]  }
   0x1   :  { %v41_v0 = vld [vmem:[%s1446_s1 + $0x80] sm:$0xff]  ;;  %v42_v1 = vld [vmem:[%s1446_s1 + $0x88] sm:$0xff]  ;;  %v43_v11 = vld [vmem:[%s1446_s1 + $0x90] sm:$0xff] }
   0x2   :  { %v25_v2 = vld [vmem:[%s1446_s1] sm:$0xff]  ;;  %v755_v3 = vpack.c.bf16 %v42_v1, %v41_v0  ;;  %v26_v4 = vld [vmem:[%s1446_s1 + $0x8] sm:$0xff]  ;;  %v44_v13 = vld [vmem:[%s1446_s1 + $0x98] sm:$0xff] }
   0x3   :  { %v73_v5 = vld [vmem:[%s1446_s1 + $0x180] sm:$0xff]  ;;  %v74_v6 = vld [vmem:[%s1446_s1 + $0x188] sm:$0xff]  ;;  %v757_v7 = vpack.c.bf16 %v26_v4, %v25_v2  ;;  %v27_v14 = vld [vmem:[%s1446_s1 + $0x10] sm:$0xff]  ;;  %v759_v16 = vpack.c.bf16 %v44_v13, %v43_v11 }
   0x4   :  { %v787_v8 = vpack.c.bf16 %v74_v6, %v73_v5  ;;  %v57_v9 = vld [vmem:[%s1446_s1 + $0x100] sm:$0xff]  ;;  %v58_v10 = vld [vmem:[%s1446_s1 + $0x108] sm:$0xff]  ;;  %756 = vmatprep.subr.bf16.mxu0 %v755_v3  ;;  %v28_v15 = vld [vmem:[%s1446_s1 + $0x18] sm:$0xff] }
   0x5   :  { %v789_v12 = vpack.c.bf16 %v58_v10, %v57_v9  ;;  %758 = vmatpush3.bf16.msra.mxu0 %v757_v7  ;;  %v761_v17 = vpack.c.bf16 %v28_v15, %v27_v14  ;;  %v75_v18 = vld [vmem:[%s1446_s1 + $0x190] sm:$0xff]  ;;  %v76_v19 = vld [vmem:[%s1446_s1 + $0x198] sm:$0xff]  ;;  %v45_v23 = vld [vmem:[%s1446_s1 + $0xa0] sm:$0xff] }
   0x6   :  { %788 = vmatprep.subr.bf16.mxu1 %v787_v8  ;;  %v59_v20 = vld [vmem:[%s1446_s1 + $0x110] sm:$0xff]  ;;  %v791_v21 = vpack.c.bf16 %v76_v19, %v75_v18  ;;  %v60_v22 = vld [vmem:[%s1446_s1 + $0x118] sm:$0xff]  ;;  %v46_v24 = vld [vmem:[%s1446_s1 + $0xa8] sm:$0xff]  ;;  %760 = vmatprep.subr.bf16.mxu0 %v759_v16 }
   0x7   :  { %790 = vmatpush3.bf16.msra.mxu1 %v789_v12  ;;  %v793_v25 = vpack.c.bf16 %v60_v22, %v59_v20  ;;  %v763_v26 = vpack.c.bf16 %v46_v24, %v45_v23  ;;  %v29_v27 = vld [vmem:[%s1446_s1 + $0x20] sm:$0xff]  ;;  %v30_v28 = vld [vmem:[%s1446_s1 + $0x28] sm:$0xff]  ;;  %v47_v35 = vld [vmem:[%s1446_s1 + $0xb0] sm:$0xff] }
   0x8   :  { %v77_v29 = vld [vmem:[%s1446_s1 + $0x1a0] sm:$0xff]  ;;  %792 = vmatprep.subr.bf16.mxu1 %v791_v21  ;;  %v78_v30 = vld [vmem:[%s1446_s1 + $0x1a8] sm:$0xff]  ;;  %v765_v33 = vpack.c.bf16 %v30_v28, %v29_v27  ;;  %v48_v36 = vld [vmem:[%s1446_s1 + $0xb8] sm:$0xff] }
   0x9   :  { %v61_v31 = vld [vmem:[%s1446_s1 + $0x120] sm:$0xff]  ;;  %v62_v32 = vld [vmem:[%s1446_s1 + $0x128] sm:$0xff]  ;;  %762 = vmatpush3.bf16.msra.mxu0 %v761_v17  ;;  %v795_v34 = vpack.c.bf16 %v78_v30, %v77_v29  ;;  %v31_v37 = vld [vmem:[%s1446_s1 + $0x30] sm:$0xff]  ;;  %v767_v39 = vpack.c.bf16 %v48_v36, %v47_v35 }
   0xa   :  { %764 = vmatprep.subr.bf16.mxu0 %v763_v26  ;;  %v797_v38 = vpack.c.bf16 %v62_v32, %v61_v31  ;;  %v32_v40 = vld [vmem:[%s1446_s1 + $0x38] sm:$0xff]  ;;  %v79_v41 = vld [vmem:[%s1446_s1 + $0x1b0] sm:$0xff]  ;;  %v49_v46 = vld [vmem:[%s1446_s1 + $0xc0] sm:$0xff] }
   0xb   :  { %794 = vmatpush3.bf16.msra.mxu1 %v793_v25  ;;  %v80_v42 = vld [vmem:[%s1446_s1 + $0x1b8] sm:$0xff]  ;;  %v63_v44 = vld [vmem:[%s1446_s1 + $0x130] sm:$0xff]  ;;  %v50_v47 = vld [vmem:[%s1446_s1 + $0xc8] sm:$0xff]  ;;  %v769_v48 = vpack.c.bf16 %v32_v40, %v31_v37 }
   0xc   :  { %796 = vmatprep.subr.bf16.mxu1 %v795_v34  ;;  %v799_v43 = vpack.c.bf16 %v80_v42, %v79_v41  ;;  %v64_v45 = vld [vmem:[%s1446_s1 + $0x138] sm:$0xff]  ;;  %v81_v49 = vld [vmem:[%s1446_s1 + $0x1c0] sm:$0xff]  ;;  %v82_v50 = vld [vmem:[%s1446_s1 + $0x1c8] sm:$0xff]  ;;  %v771_v52 = vpack.c.bf16 %v50_v47, %v49_v46 }
   0xd   :  { %766 = vmatpush3.bf16.msra.mxu0 %v765_v33  ;;  %v801_v51 = vpack.c.bf16 %v64_v45, %v63_v44  ;;  %v33_v53 = vld [vmem:[%s1446_s1 + $0x40] sm:$0xff]  ;;  %v34_v54 = vld [vmem:[%s1446_s1 + $0x48] sm:$0xff]  ;;  %v803_v56 = vpack.c.bf16 %v82_v50, %v81_v49  ;;  %v51_v58 = vld [vmem:[%s1446_s1 + $0xd0] sm:$0xff] }
   0xe   :  { %768 = vmatprep.subr.bf16.mxu0 %v767_v39  ;;  %v65_v55 = vld [vmem:[%s1446_s1 + $0x140] sm:$0xff]  ;;  %v66_v57 = vld [vmem:[%s1446_s1 + $0x148] sm:$0xff]  ;;  %v52_v59 = vld [vmem:[%s1446_s1 + $0xd8] sm:$0xff]  ;;  %v773_v62 = vpack.c.bf16 %v34_v54, %v33_v53 }
   0xf   :  { %798 = vmatpush3.bf16.msra.mxu1 %v797_v38  ;;  %v83_v60 = vld [vmem:[%s1446_s1 + $0x1d0] sm:$0xff]  ;;  %v84_v61 = vld [vmem:[%s1446_s1 + $0x1d8] sm:$0xff]  ;;  %v805_v63 = vpack.c.bf16 %v66_v57, %v65_v55  ;;  %v775_v0 = vpack.c.bf16 %v52_v59, %v51_v58  ;;  %v53_v6 = vld [vmem:[%s1446_s1 + $0xe0] sm:$0xff] }
  0x10   :  { %800 = vmatprep.subr.bf16.mxu1 %v799_v43  ;;  %v35_v1 = vld [vmem:[%s1446_s1 + $0x50] sm:$0xff]  ;;  %v36_v2 = vld [vmem:[%s1446_s1 + $0x58] sm:$0xff]  ;;  %v807_v4 = vpack.c.bf16 %v84_v61, %v83_v60  ;;  %v54_v7 = vld [vmem:[%s1446_s1 + $0xe8] sm:$0xff] }
  0x11   :  { %770 = vmatpush3.bf16.msra.mxu0 %v769_v48  ;;  %v67_v3 = vld [vmem:[%s1446_s1 + $0x150] sm:$0xff]  ;;  %v68_v5 = vld [vmem:[%s1446_s1 + $0x158] sm:$0xff]  ;;  %v85_v8 = vld [vmem:[%s1446_s1 + $0x1e0] sm:$0xff]  ;;  %v777_v10 = vpack.c.bf16 %v36_v2, %v35_v1  ;;  %v779_v14 = vpack.c.bf16 %v54_v7, %v53_v6 }
  0x12   :  { %772 = vmatprep.subr.bf16.mxu0 %v771_v52  ;;  %v86_v9 = vld [vmem:[%s1446_s1 + $0x1e8] sm:$0xff]  ;;  %v37_v11 = vld [vmem:[%s1446_s1 + $0x60] sm:$0xff]  ;;  %v809_v13 = vpack.c.bf16 %v68_v5, %v67_v3  ;;  %v55_v19 = vld [vmem:[%s1446_s1 + $0xf0] sm:$0xff] }
  0x13   :  { %802 = vmatpush3.bf16.msra.mxu1 %v801_v51  ;;  %v38_v12 = vld [vmem:[%s1446_s1 + $0x68] sm:$0xff]  ;;  %v69_v15 = vld [vmem:[%s1446_s1 + $0x160] sm:$0xff]  ;;  %v811_v18 = vpack.c.bf16 %v86_v9, %v85_v8  ;;  %v56_v20 = vld [vmem:[%s1446_s1 + $0xf8] sm:$0xff] }
  0x14   :  { %804 = vmatprep.subr.bf16.mxu1 %v803_v56  ;;  %v70_v16 = vld [vmem:[%s1446_s1 + $0x168] sm:$0xff]  ;;  %v21_v17 = vld [vmem:[%s1445_s0] sm:$0xff]  ;;  %v87_v23 = vld [vmem:[%s1446_s1 + $0x1f0] sm:$0xff]  ;;  %v781_v26 = vpack.c.bf16 %v38_v12, %v37_v11  ;;  %v783_v28 = vpack.c.bf16 %v56_v20, %v55_v19 }
  0x15   :  { %774 = vmatpush3.bf16.msra.mxu0 %v773_v62  ;;  %v164_v21 = vcombine.high %v21_v17, %v21_v17  ;;  %v22_v22 = vld [vmem:[%s1445_s0 + $0x8] sm:$0xff]  ;;  %v88_v24 = vld [vmem:[%s1446_s1 + $0x1f8] sm:$0xff]  ;;  %v813_v27 = vpack.c.bf16 %v70_v16, %v69_v15  ;;  %v39_v29 = vld [vmem:[%s1446_s1 + $0x70] sm:$0xff] }
  0x16   :  { %776 = vmatprep.subr.bf16.mxu0 %v775_v0  ;;  %v165_v25 = vcombine.high %v22_v22, %v22_v22  ;;  %v40_v30 = vld [vmem:[%s1446_s1 + $0x78] sm:$0xff]  ;;  %v71_v31 = vld [vmem:[%s1446_s1 + $0x170] sm:$0xff]  ;;  %v815_v32 = vpack.c.bf16 %v88_v24, %v87_v23  ;;  %v105_v34 = vld [vmem:[%s1446_s1 + $0x280] sm:$0xff] }
  0x17   :  { %806 = vmatpush3.bf16.msra.mxu1 %v805_v63  ;;  %236 = vmatprep.mubr.f32.mxu0 %v164_v21  ;;  %v72_v33 = vld [vmem:[%s1446_s1 + $0x178] sm:$0xff]  ;;  %v106_v35 = vld [vmem:[%s1446_s1 + $0x288] sm:$0xff]  ;;  %v137_v36 = vld [vmem:[%s1446_s1 + $0x380] sm:$0xff]  ;;  %v785_v38 = vpack.c.bf16 %v40_v30, %v39_v29 }
  0x18   :  { %808 = vmatprep.subr.bf16.mxu1 %v807_v4  ;;  %306 = vmatprep.mubr.f32.mxu1 %v165_v25  ;;  %v138_v37 = vld [vmem:[%s1446_s1 + $0x388] sm:$0xff]  ;;  %v817_v39 = vpack.c.bf16 %v72_v33, %v71_v31  ;;  %v819_v40 = vpack.c.bf16 %v106_v35, %v105_v34  ;;  %v89_v41 = vld [vmem:[%s1446_s1 + $0x200] sm:$0xff]  ;;  %v107_v46 = vld [vmem:[%s1446_s1 + $0x290] sm:$0xff] }
  0x19   :  { %778 = vmatpush3.bf16.msra.mxu0 %v777_v10  ;;  %v90_v42 = vld [vmem:[%s1446_s1 + $0x208] sm:$0xff]  ;;  %v121_v43 = vld [vmem:[%s1446_s1 + $0x300] sm:$0xff]  ;;  %v851_v44 = vpack.c.bf16 %v138_v37, %v137_v36  ;;  %v108_v47 = vld [vmem:[%s1446_s1 + $0x298] sm:$0xff] }
  0x1a   :  { %780 = vmatprep.subr.bf16.mxu0 %v779_v14  ;;  %v122_v45 = vld [vmem:[%s1446_s1 + $0x308] sm:$0xff]  ;;  %v139_v48 = vld [vmem:[%s1446_s1 + $0x390] sm:$0xff]  ;;  %v140_v49 = vld [vmem:[%s1446_s1 + $0x398] sm:$0xff]  ;;  %v821_v50 = vpack.c.bf16 %v90_v42, %v89_v41  ;;  %v823_v52 = vpack.c.bf16 %v108_v47, %v107_v46 }
  0x1b   :  { %810 = vmatpush3.bf16.msra.mxu1 %v809_v13  ;;  %v853_v51 = vpack.c.bf16 %v122_v45, %v121_v43  ;;  %v91_v53 = vld [vmem:[%s1446_s1 + $0x210] sm:$0xff]  ;;  %v92_v54 = vld [vmem:[%s1446_s1 + $0x218] sm:$0xff]  ;;  %v855_v56 = vpack.c.bf16 %v140_v49, %v139_v48  ;;  %v109_v58 = vld [vmem:[%s1446_s1 + $0x2a0] sm:$0xff] }
  0x1c   :  { %812 = vmatprep.subr.bf16.mxu1 %v811_v18  ;;  %v123_v55 = vld [vmem:[%s1446_s1 + $0x310] sm:$0xff]  ;;  %v124_v57 = vld [vmem:[%s1446_s1 + $0x318] sm:$0xff]  ;;  %v110_v59 = vld [vmem:[%s1446_s1 + $0x2a8] sm:$0xff]  ;;  %v825_v62 = vpack.c.bf16 %v92_v54, %v91_v53 }
  0x1d   :  { %782 = vmatpush3.bf16.msra.mxu0 %v781_v26  ;;  %v141_v60 = vld [vmem:[%s1446_s1 + $0x3a0] sm:$0xff]  ;;  %v142_v61 = vld [vmem:[%s1446_s1 + $0x3a8] sm:$0xff]  ;;  %v857_v63 = vpack.c.bf16 %v124_v57, %v123_v55  ;;  %v827_v0 = vpack.c.bf16 %v110_v59, %v109_v58  ;;  %v111_v6 = vld [vmem:[%s1446_s1 + $0x2b0] sm:$0xff] }
  0x1e   :  { %784 = vmatprep.subr.bf16.mxu0 %v783_v28  ;;  %v93_v1 = vld [vmem:[%s1446_s1 + $0x220] sm:$0xff]  ;;  %v94_v2 = vld [vmem:[%s1446_s1 + $0x228] sm:$0xff]  ;;  %v859_v4 = vpack.c.bf16 %v142_v61, %v141_v60  ;;  %v112_v7 = vld [vmem:[%s1446_s1 + $0x2b8] sm:$0xff] }
  0x1f   :  { %814 = vmatpush3.bf16.msra.mxu1 %v813_v27  ;;  %v125_v3 = vld [vmem:[%s1446_s1 + $0x320] sm:$0xff]  ;;  %v126_v5 = vld [vmem:[%s1446_s1 + $0x328] sm:$0xff]  ;;  %v143_v8 = vld [vmem:[%s1446_s1 + $0x3b0] sm:$0xff]  ;;  %v829_v10 = vpack.c.bf16 %v94_v2, %v93_v1  ;;  %v831_v13 = vpack.c.bf16 %v112_v7, %v111_v6 }
  0x20   :  { %816 = vmatprep.subr.bf16.mxu1 %v815_v32  ;;  %v144_v9 = vld [vmem:[%s1446_s1 + $0x3b8] sm:$0xff]  ;;  %v95_v11 = vld [vmem:[%s1446_s1 + $0x230] sm:$0xff]  ;;  %v861_v12 = vpack.c.bf16 %v126_v5, %v125_v3  ;;  %v113_v18 = vld [vmem:[%s1446_s1 + $0x2c0] sm:$0xff] }
  0x21   :  { %786 = vmatpush3.bf16.msra.mxu0 %v785_v38  ;;  %v96_v14 = vld [vmem:[%s1446_s1 + $0x238] sm:$0xff]  ;;  %v127_v15 = vld [vmem:[%s1446_s1 + $0x330] sm:$0xff]  ;;  %v114_v19 = vld [vmem:[%s1446_s1 + $0x2c8] sm:$0xff] }
  0x22   :  { %820 = vmatprep.subr.bf16.mxu0 %v819_v40  ;;  %v128_v16 = vld [vmem:[%s1446_s1 + $0x338] sm:$0xff]  ;;  %v145_v20 = vld [vmem:[%s1446_s1 + $0x3c0] sm:$0xff]  ;;  %v146_v21 = vld [vmem:[%s1446_s1 + $0x3c8] sm:$0xff]  ;;  %v833_v24 = vpack.c.bf16 %v96_v14, %v95_v11 }
  0x23   :  { %818 = vmatpush3.bf16.msra.mxu1 %v817_v39  ;;  %v1287_v23 = vld [vmem:[%s1445_s0 + $0x18] sm:$0xff] }
  0x24   :  { %852 = vmatprep.subr.bf16.mxu1 %v851_v44  ;;  %237 = vmatmul.mubr.f32.vlgmr.msra.gmra.mrb[0].mxu0 %v21_v17  ;;  %v863_v17 = vpack.c.bf16 %v144_v9, %v143_v8  ;;  %v167_v26 = vcombine.high %v1287_v23, %v1287_v23 }
  0x25   :  { %822 = vmatpush3.bf16.msra.mxu0 %v821_v50 }
  0x26   :  { %307 = vmatmul.mubr.f32.vlgmr.msra.gmra.mrb[0].mxu1 %v22_v22  ;;  %824 = vmatprep.subr.bf16.mxu0 %v823_v52  ;;  %v1282_v22 = vld [vmem:[%s1445_s0 + $0x10] sm:$0xff] }
  0x27   :  { %854 = vmatpush3.bf16.msra.mxu1 %v853_v51  ;;  %v166_v25 = vcombine.high %v1282_v22, %v1282_v22 }
  0x28   :  { %856 = vmatprep.subr.bf16.mxu1 %v855_v56 }
  0x29   :  { %826 = vmatpush3.bf16.msra.mxu0 %v825_v62 }
  0x2a   :  { %828 = vmatprep.subr.bf16.mxu0 %v827_v0 }
  0x2b   :  { %858 = vmatpush3.bf16.msra.mxu1 %v857_v63 }
  0x2c   :  { %860 = vmatprep.subr.bf16.mxu1 %v859_v4 }
  0x2d   :  { %830 = vmatpush3.bf16.msra.mxu0 %v829_v10 }
  0x2e   :  { %10 = vsyncpa [#allocation3], 0  ;;  %832 = vmatprep.subr.bf16.mxu0 %v831_v13  ;;  %v865_v27 = vpack.c.bf16 %v128_v16, %v127_v15  ;;  %v835_v28 = vpack.c.bf16 %v114_v19, %v113_v18  ;;  %v97_v29 = vld [vmem:[%s1446_s1 + $0x240] sm:$0xff]  ;;  %v98_v30 = vld [vmem:[%s1446_s1 + $0x248] sm:$0xff]  ;;  %v867_v32 = vpack.c.bf16 %v146_v21, %v145_v20  ;;  %376 = vmatprep.mubr.f32.mxu0 %v166_v25  ;;  %v939_v11 = vmov 0.0|0.0  }
  0x2f   :  { %862 = vmatpush3.bf16.msra.mxu1 %v861_v12  ;;  %v129_v31 = vld [vmem:[%s1446_s1 + $0x340] sm:$0xff]  ;;  %v130_v33 = vld [vmem:[%s1446_s1 + $0x348] sm:$0xff]  ;;  %v115_v34 = vld [vmem:[%s1446_s1 + $0x2d0] sm:$0xff]  ;;  %446 = vmatprep.mubr.f32.mxu1 %v167_v26  ;;  %v837_v38 = vpack.c.bf16 %v98_v30, %v97_v29  ;;  %vm940_vm0 = vmmov 0  }
  0x30   :  { %864 = vmatprep.subr.bf16.mxu1 %v863_v17  ;;  %v116_v35 = vld [vmem:[%s1446_s1 + $0x2d8] sm:$0xff]  ;;  %v147_v36 = vld [vmem:[%s1446_s1 + $0x3d0] sm:$0xff]  ;;  %v869_v39 = vpack.c.bf16 %v130_v33, %v129_v31  ;;  %v117_v46 = vld [vmem:[%s1446_s1 + $0x2e0] sm:$0xff]  ;;  %v941_v33 = vmov 0.0  }
  0x31   :  { %v148_v37 = vld [vmem:[%s1446_s1 + $0x3d8] sm:$0xff]  ;;  %834 = vmatpush3.bf16.msra.mxu0 %v833_v24  ;;  %v839_v40 = vpack.c.bf16 %v116_v35, %v115_v34  ;;  %v99_v41 = vld [vmem:[%s1446_s1 + $0x250] sm:$0xff]  ;;  %v118_v47 = vld [vmem:[%s1446_s1 + $0x2e8] sm:$0xff] }
  0x32   :  { %836 = vmatprep.subr.bf16.mxu0 %v835_v28  ;;  %v100_v42 = vld [vmem:[%s1446_s1 + $0x258] sm:$0xff]  ;;  %v131_v43 = vld [vmem:[%s1446_s1 + $0x350] sm:$0xff]  ;;  %v871_v44 = vpack.c.bf16 %v148_v37, %v147_v36  ;;  %v149_v48 = vld [vmem:[%s1446_s1 + $0x3e0] sm:$0xff]  ;;  %v843_v52 = vpack.c.bf16 %v118_v47, %v117_v46 }
  0x33   :  { %866 = vmatpush3.bf16.msra.mxu1 %v865_v27  ;;  %v132_v45 = vld [vmem:[%s1446_s1 + $0x358] sm:$0xff]  ;;  %v150_v49 = vld [vmem:[%s1446_s1 + $0x3e8] sm:$0xff]  ;;  %v841_v50 = vpack.c.bf16 %v100_v42, %v99_v41  ;;  %v101_v53 = vld [vmem:[%s1446_s1 + $0x260] sm:$0xff] }
  0x34   :  { %868 = vmatprep.subr.bf16.mxu1 %v867_v32  ;;  %v873_v51 = vpack.c.bf16 %v132_v45, %v131_v43  ;;  %v102_v54 = vld [vmem:[%s1446_s1 + $0x268] sm:$0xff]  ;;  %v133_v55 = vld [vmem:[%s1446_s1 + $0x360] sm:$0xff]  ;;  %v875_v56 = vpack.c.bf16 %v150_v49, %v149_v48  ;;  %v119_v58 = vld [vmem:[%s1446_s1 + $0x2f0] sm:$0xff] }
  0x35   :  { %838 = vmatpush3.bf16.msra.mxu0 %v837_v38  ;;  %v134_v57 = vld [vmem:[%s1446_s1 + $0x368] sm:$0xff]  ;;  %v120_v59 = vld [vmem:[%s1446_s1 + $0x2f8] sm:$0xff]  ;;  %v151_v60 = vld [vmem:[%s1446_s1 + $0x3f0] sm:$0xff]  ;;  %v845_v62 = vpack.c.bf16 %v102_v54, %v101_v53 }
  0x36   :  { %840 = vmatprep.subr.bf16.mxu0 %v839_v40  ;;  %v152_v61 = vld [vmem:[%s1446_s1 + $0x3f8] sm:$0xff]  ;;  %v877_v63 = vpack.c.bf16 %v134_v57, %v133_v55  ;;  %v847_v0 = vpack.c.bf16 %v120_v59, %v119_v58  ;;  %v103_v1 = vld [vmem:[%s1446_s1 + $0x270] sm:$0xff]  ;;  %v453_v8 = vld [vmem:[%s1448_s3] sm:$0xff] }
  0x37   :  { %870 = vmatpush3.bf16.msra.mxu1 %v869_v39  ;;  %v104_v2 = vld [vmem:[%s1446_s1 + $0x278] sm:$0xff]  ;;  %v879_v3 = vpack.c.bf16 %v152_v61, %v151_v60  ;;  %v135_v4 = vld [vmem:[%s1446_s1 + $0x370] sm:$0xff]  ;;  %v454_v9 = vld [vmem:[%s1448_s3 + $0x8] sm:$0xff] }
  0x38   :  { %872 = vmatprep.subr.bf16.mxu1 %v871_v44  ;;  %v136_v5 = vld [vmem:[%s1446_s1 + $0x378] sm:$0xff]  ;;  %v849_v6 = vpack.c.bf16 %v104_v2, %v103_v1  ;;  %v455_v10 = vld [vmem:[%s1448_s3 + $0x10] sm:$0xff]  ;;  %v884_v12 = vpack.c.bf16 %v454_v9, %v453_v8  ;;  %v457_v15 = vld [vmem:[%s1448_s3 + $0x20] sm:$0xff] }
  0x39   :  { %842 = vmatpush3.bf16.msra.mxu0 %v841_v50  ;;  %v881_v7 = vpack.c.bf16 %v136_v5, %v135_v4  ;;  %v456_v13 = vld [vmem:[%s1448_s3 + $0x18] sm:$0xff]  ;;  %v458_v16 = vld [vmem:[%s1448_s3 + $0x28] sm:$0xff]  ;;  %v459_v18 = vld [vmem:[%s1448_s3 + $0x30] sm:$0xff] }
  0x3a   :  { %844 = vmatprep.subr.bf16.mxu0 %v843_v52  ;;  %v887_v14 = vpack.c.bf16 %v456_v13, %v455_v10  ;;  %v890_v17 = vpack.c.bf16 %v458_v16, %v457_v15  ;;  %v460_v19 = vld [vmem:[%s1448_s3 + $0x38] sm:$0xff]  ;;  %v461_v21 = vld [vmem:[%s1448_s3 + $0x40] sm:$0xff]  ;;  %v463_v24 = vld [vmem:[%s1448_s3 + $0x50] sm:$0xff] }
  0x3b   :  { %874 = vmatpush3.bf16.msra.mxu1 %v873_v51  ;;  %v893_v20 = vpack.c.bf16 %v460_v19, %v459_v18  ;;  %v464_v25 = vld [vmem:[%s1448_s3 + $0x58] sm:$0xff]  ;;  %v465_v27 = vld [vmem:[%s1448_s3 + $0x60] sm:$0xff]  ;;  %v466_v28 = vld [vmem:[%s1448_s3 + $0x68] sm:$0xff] }
  0x3c   :  { %876 = vmatprep.subr.bf16.mxu1 %v875_v56  ;;  %v899_v26 = vpack.c.bf16 %v464_v25, %v463_v24  ;;  %v902_v29 = vpack.c.bf16 %v466_v28, %v465_v27  ;;  %v467_v30 = vld [vmem:[%s1448_s3 + $0x70] sm:$0xff]  ;;  %v468_v31 = vld [vmem:[%s1448_s3 + $0x78] sm:$0xff]  ;;  %v561_v35 = vld [vmem:[%s1447_s2] ss:$0 sm:$0xff]  ;;  %s942_s2 = smov [#allocation2]  }
  0x3d   :  { %846 = vmatpush3.bf16.msra.mxu0 %v845_v62  ;;  %v905_v32 = vpack.c.bf16 %v468_v31, %v467_v30  ;;  %v562_v52 = vld [vmem:[%s1449_s4] ss:$0 sm:$0xff]  ;;  %s553_s11 = sshll.u32 %s942_s2, 4  ;;  %s554_s11 = int_to_ptr.vmem [resolvable:$true] %s553_s11 }
  0x3e   :  { %848 = vmatprep.subr.bf16.mxu0 %v847_v0  ;;  %s915_s12 = scalar_lea.vmem %s554_s11, 64  ;;  %p920_p1 = scmp.lt.s32.totalorder %s554_s11, %s554_s11 }
  0x3f   :  { %878 = vmatpush3.bf16.msra.mxu1 %v877_v63  ;;  %p916_p0 = scmp.ne.s32.totalorder %s554_s11, %s915_s12  ;;  %p921_p2 = scmp.lt.s32.totalorder %s915_s12, %s915_s12 }
  0x40   :  { %880 = vmatprep.subr.bf16.mxu1 %v879_v3 }
  0x41   :  { %850 = vmatpush3.bf16.msra.mxu0 %v849_v6  ;;  %p922_p3 = por %p921_p2, %p920_p1 }
  0x42   :  { %883 = vmatprep.subr.bf16.mxu0 %v939_v11 }
  0x43   :  { %882 = vmatpush3.bf16.msra.mxu1 %v881_v7  ;;  %p923_p4 = pnand %p922_p3, %p916_p0 }
  0x44   :  { %377 = vmatmul.mubr.f32.vlgmr.msra.gmra.mrb[2].mxu0 %v1282_v22  ;;  %v462_v22 = vld [vmem:[%s1448_s3 + $0x48] sm:$0xff] }
  0x45   :  { %885 = vmatpush3.bf16.msra.mxu0 %v884_v12  ;;  %752 = vmatprep.mubr.msk.f32.mxu0 %vm940_vm0, %v941_v33 }
  0x46   :  { %447 = vmatmul.mubr.f32.vlgmr.msra.gmra.mrb[2].mxu1 %v1287_v23  ;;  %886 = vmatprep.subr.bf16.mxu0 %v939_v11  ;;  %v896_v23 = vpack.c.bf16 %v462_v22, %v461_v21 }
  0x49   :  { %888 = vmatpush3.bf16.msra.mxu0 %v887_v14 }
  0x4a   :  { %889 = vmatprep.subr.bf16.mxu0 %v939_v11 }
  0x4d   :  { %891 = vmatpush3.bf16.msra.mxu0 %v890_v17 }
  0x4e   :  { %892 = vmatprep.subr.bf16.mxu0 %v939_v11 }
  0x51   :  { %894 = vmatpush3.bf16.msra.mxu0 %v893_v20 }
  0x52   :  { %895 = vmatprep.subr.bf16.mxu0 %v939_v11 }
  0x55   :  { %897 = vmatpush3.bf16.msra.mxu0 %v896_v23 }
  0x56   :  { %898 = vmatprep.subr.bf16.mxu0 %v939_v11 }
  0x59   :  { %900 = vmatpush3.bf16.msra.mxu0 %v899_v26 }
  0x5a   :  { %901 = vmatprep.subr.bf16.mxu0 %v939_v11 }
  0x5d   :  { %903 = vmatpush3.bf16.msra.mxu0 %v902_v29 }
  0x5e   :  { %904 = vmatprep.subr.bf16.mxu0 %v939_v11 }
  0x61   :  { %906 = vmatpush3.bf16.msra.mxu0 %v905_v32 }
  0xf7   :  { %v595_v34 = vpop.f32.mrb[0].mxu0 }
  0xf8   :  { %v596_v36 = vpop.f32.mrb[1].mxu0 }
  0xf9   :  { %v630_v37 = vpop.f32.mrb[0].mxu1  ;;  %v597_v38 = vadd.f32 %v596_v36, %v595_v34 }
  0xfa   :  { %v631_v39 = vpop.f32.mrb[1].mxu1 }
  0xfb   :  { %v632_v40 = vadd.f32 %v631_v39, %v630_v37  ;;  %v239_v41 = vadd.f32 %v597_v38, %v561_v35 }
  0xfd   :  { %v309_v42 = vadd.f32 %v632_v40, %v239_v41 }
 0x117   :  { %v665_v43 = vpop.f32.mrb[2].mxu0 }
 0x118   :  { %v666_v44 = vpop.f32.mrb[3].mxu0 }
 0x119   :  { %v700_v45 = vpop.f32.mrb[2].mxu1  ;;  %v667_v46 = vadd.f32 %v666_v44, %v665_v43 }
 0x11a   :  { %v701_v47 = vpop.f32.mrb[3].mxu1 }
 0x11b   :  { %v702_v48 = vadd.f32 %v701_v47, %v700_v45  ;;  %v379_v49 = vadd.f32 %v667_v46, %v309_v42 }
 0x11d   :  { %v449_v50 = vadd.f32 %v702_v48, %v379_v49 }
 0x11f   :  { %v452_v51 = vmax.f32 %v449_v50, 0.0 }
 0x121   :  { %753 = vmatmul.mubr.f32.vlgmr.msra.gmra.mrb[4].mxu0 %v452_v51 }
 0x1f4   :  { %v542_v53 = vpop.f32.mrb[4].mxu0 }
 0x1f5   :  { %v543_v54 = vadd.f32 %v562_v52, %v542_v53  ;;  %v754_v55 = vpop.f32.mrb[5].mxu0 }
 0x1f7   :  { %546 = vst [vmem:[#allocation2] sm:$0xf] %v543_v54 }
 0x1f8   :  { %926 = shalt.err (!%p923_p4)
}
 0x1f9   :  { %s927_s15 = scalar_lea.hbm %s1450_s5, 64 }
 0x1fa   :  { %p928_p5 = scmp.ne.s32.totalorder %s1450_s5, %s927_s15  ;;  %p931_p6 = scmp.lt.u32.totalorder %s927_s15, %s1450_s5 }
 0x1fc   :  { %p933_p7 = pnand %p931_p6, %p928_p5 }
 0x1fe   :  { %936 = shalt.err (!%p933_p7)
}
 0x1ff   :  { %556 = dma.vmem_to_hbm [thread:$0]  %s554_s11, 64, %s1450_s5, [#allocation3]  }
 0x200   :  { %937 = dma.done.wait [#allocation3], 64  }
 0x201   :  { %938 = vsyncadd [#allocation3], 4294967232 }
 0x202   :  { %560 = vsyncpa [#allocation3], 1 }

</bundles_post_ra>
